<compile_context>
chip_gen: v7x
topology: tpu7x:2x2x1
jax: 0.10.0
libtpu: 0.0.40
codegen_flags: <defaults>
</compile_context>

<pallas_src>
import functools

import jax
import jax.numpy as jnp
from jax.experimental import pallas as pl
from jax.experimental.pallas import tpu as pltpu


def _round_up(x, m):
    return (x + m - 1) // m * m


def _cdiv(a, b):
    return -(-a // b)


def patch_embed_kernel(x_ref, w_ref, p_ref, o_ref, *, inv_e: float, eps: float):
    # Patch projection (the conv): rows of patches @ flattened conv weight (MXU).
    y = jnp.dot(x_ref[...], w_ref[...], preferred_element_type=jnp.float32)
    y = y + p_ref[0:1, :]                      # conv bias (packed row 0)

    # One-pass LayerNorm statistics over the true embed dim E (sum & sum-of-squares,
    # multiplied by a precomputed 1/E).  Clamp the variance: rounding can make
    # E[y^2] - E[y]^2 slightly negative, which would NaN through rsqrt.
    s1 = jnp.sum(y, axis=-1, keepdims=True)
    s2 = jnp.sum(y * y, axis=-1, keepdims=True)
    mean = s1 * inv_e
    var = jnp.maximum(s2 * inv_e - mean * mean, 0.0)
    y_hat = (y - mean) * jax.lax.rsqrt(var + eps)

    # gamma (row 1) / beta (row 2).
    o_ref[...] = (y_hat * p_ref[1:2, :] + p_ref[2:3, :]).astype(o_ref.dtype)


def _pick_row_tiling(M, tm_cap):
    """Choose (tm, n_tiles, Mp) with tm % 8 == 0 and tm <= ~tm_cap.

    Prefers an exact split of M (no padded rows -> no post-kernel slice/copy) and
    an even number of tiles (so ("parallel",) splits across both v7x TensorCores).
    """
    M8 = _round_up(max(M, 1), 8)
    n_min = max(1, _cdiv(M8, tm_cap))
    if n_min == 1 and M8 >= 4096:
        n_min = 2                                  # give megacore >= 2 tiles
    exact = [n for n in range(n_min, n_min + 65)
             if M % n == 0 and (M // n) % 8 == 0 and (M // n) >= 8]
    for n in exact:                                # prefer an even tile count
        if n == 1 or n % 2 == 0:
            return M // n, n, M
    if exact:
        n = exact[0]
        return M // n, n, M
    # Fallback: minimal padding (< 8 rows per tile); triggers a tail slice.
    n = n_min if (n_min == 1 or n_min % 2 == 0) else n_min + 1
    tm = _round_up(_cdiv(M8, n), 8)
    return tm, n, n * tm


def patch_embed(x, conv_w, conv_b, ln_g, ln_b, patch_shape, tm_max=8192, eps=1e-5):
    """x: (B, C, H, W) NCHW like PyTorch. Returns (B, H//ph, W//pw, E)."""
    B, C, H, W = x.shape
    ph, pw = patch_shape
    assert H % ph == 0 and W % pw == 0
    Hp, Wp = H // ph, W // pw
    E = conv_w.shape[0]
    K = C * ph * pw
    M = B * Hp * Wp
    itemsize = jnp.dtype(x.dtype).itemsize

    # im2col as ONE fused XLA transpose pass: rows = patches in (b, hp, wp) order,
    # cols = (c, i, j) order matching the flattened Conv2d OIHW weight.
    # TODO(synk): fusing this into the kernel (BlockSpec over raw NCHW strips plus
    # an in-VMEM (C, ph, W) -> (Wp, K) relayout) was evaluated; with pw=4 the
    # relayout needs minor-dim reshapes/transposes that lower to lane/sublane
    # shuffles costing more than the single HBM pass XLA's transpose takes at
    # these shapes, so it intentionally stays outside the pallas_call.
    xp = x.reshape(B, C, Hp, ph, Wp, pw)
    xp = xp.transpose(0, 2, 4, 1, 3, 5).reshape(M, K)

    # Row tiling with an explicit VMEM budget.  Budget uses the lane-padded K/E
    # widths (VMEM layout pads the minor dim to 128) and double-buffered in+out.
    lane = 128
    row_bytes = (_round_up(K, lane) + _round_up(E, lane)) * itemsize
    tm_vmem = max(8, ((20 << 20) // (2 * row_bytes)) // 8 * 8)
    tm, n_tiles, Mp = _pick_row_tiling(M, min(tm_max, tm_vmem))
    if Mp != M:                                    # rare: M not a multiple of 8
        xp = jnp.pad(xp, ((0, Mp - M), (0, 0)))

    # Projection weight at the true E (no lane padding -> no post-kernel slice).
    wk = conv_w.reshape(E, K).T.astype(x.dtype)    # (K, E)

    # Pack conv bias / LN gamma / LN beta into one (8, E) sublane tile (one DMA'd
    # constant input instead of three).
    params = jnp.zeros((8, E), jnp.float32)
    params = params.at[0].set(conv_b.astype(jnp.float32))
    params = params.at[1].set(ln_g.astype(jnp.float32))
    params = params.at[2].set(ln_b.astype(jnp.float32))

    # Explicit scoped-VMEM limit: double-buffered row tiles + weight + params
    # + 25% / 2 MiB headroom (fits v5e/v6e/v7x physical VMEM).
    vmem_need = (2 * tm * row_bytes
                 + 2 * K * _round_up(E, lane) * itemsize
                 + 2 * 8 * _round_up(E, lane) * 4)
    vmem_limit = int(max(16 << 20, min(vmem_need + vmem_need // 4 + (2 << 20),
                                       56 << 20)))

    kernel = functools.partial(patch_embed_kernel, inv_e=1.0 / E, eps=eps)

    out = pl.pallas_call(
        kernel,
        out_shape=jax.ShapeDtypeStruct((Mp, E), x.dtype),
        grid_spec=pltpu.PrefetchScalarGridSpec(
            num_scalar_prefetch=0,
            grid=(n_tiles,),
            in_specs=[
                pl.BlockSpec((tm, K), lambda i: (i, 0)),   # patch rows (tiled)
                pl.BlockSpec((K, E), lambda i: (0, 0)),    # projection weight
                pl.BlockSpec((8, E), lambda i: (0, 0)),    # packed bias/gamma/beta
            ],
            out_specs=pl.BlockSpec((tm, E), lambda i: (i, 0)),
        ),
        compiler_params=pltpu.CompilerParams(
            dimension_semantics=("parallel",),
            vmem_limit_bytes=vmem_limit),
    )(xp, wk, params)

    if Mp != M:
        out = out[:M]          # only taken when M % 8 != 0 (padded fallback)
    return out.reshape(B, Hp, Wp, E)


def _reference(x, conv_w, conv_b, ln_g, ln_b, patch_shape):
    # Pure-JAX reference of the PyTorch forward (conv -> permute -> layernorm).
    y = jax.lax.conv_general_dilated(
        x, conv_w, window_strides=patch_shape, padding="VALID",
        dimension_numbers=("NCHW", "OIHW", "NCHW"))
    y = y + conv_b.reshape(1, -1, 1, 1)
    y = jnp.transpose(y, (0, 2, 3, 1))
    mean = jnp.mean(y, axis=-1, keepdims=True)
    var = jnp.mean(jnp.square(y - mean), axis=-1, keepdims=True)
    return (y - mean) * jax.lax.rsqrt(var + 1e-5) * ln_g + ln_b


if __name__ == "__main__":
    key = jax.random.PRNGKey(0)
    B, C, H, W = 2, 4, 16, 16
    ph, pw, E = 4, 4, 32

    k1, k2, k3 = jax.random.split(key, 3)
    x = jax.random.normal(k1, (B, C, H, W), jnp.float32)
    conv_w = jax.random.normal(k2, (E, C, ph, pw), jnp.float32) * 0.05
    conv_b = jax.random.normal(k3, (E,), jnp.float32) * 0.05
    ln_g = jnp.ones((E,), jnp.float32)    # PyTorch LayerNorm default init
    ln_b = jnp.zeros((E,), jnp.float32)

    out = patch_embed(x, conv_w, conv_b, ln_g, ln_b, (ph, pw))
    out = jax.block_until_ready(out)

    ref = _reference(x, conv_w, conv_b, ln_g, ln_b, (ph, pw))
    assert out.shape == (B, H // ph, W // pw, E)
    assert jnp.allclose(out, ref, rtol=1e-3, atol=1e-3)

    print("KERNEL_OK")
</pallas_src>

<mosaic_0001>
module attributes {stable_mosaic.version = 11 : i64} {
  func.func @patch_embed_kernel(%arg0: i32, %arg1: memref<32x64xf32, #tpu.memory_space<vmem>>, %arg2: memref<64x32xf32, #tpu.memory_space<vmem>>, %arg3: memref<8x32xf32, #tpu.memory_space<vmem>>, %arg4: memref<32x32xf32, #tpu.memory_space<vmem>>) attributes {dimension_semantics = [#tpu.dimension_semantics<parallel>], iteration_bounds = array<i64: 1>, scalar_prefetch = 0 : i64, scratch_operands = 0 : i64, tpu.core_type = #tpu.core_type<tc>, window_params = [{transform_indices = @transform_0, window_bounds = array<i64: 32, 64>}, {pipeline_mode = #tpu.pipeline_mode<synchronous>, transform_indices = @transform_1, window_bounds = array<i64: 64, 32>}, {pipeline_mode = #tpu.pipeline_mode<synchronous>, transform_indices = @transform_2, window_bounds = array<i64: 8, 32>}, {transform_indices = @transform_3, window_bounds = array<i64: 32, 32>}]} {
    %c0 = arith.constant 0 : index
    %c0_0 = arith.constant 0 : index
    %0 = vector.load %arg1[%c0, %c0_0] : memref<32x64xf32, #tpu.memory_space<vmem>>, vector<32x64xf32>
    %c0_1 = arith.constant 0 : index
    %c0_2 = arith.constant 0 : index
    %1 = vector.load %arg2[%c0_1, %c0_2] : memref<64x32xf32, #tpu.memory_space<vmem>>, vector<64x32xf32>
    %cst = arith.constant dense<0.000000e+00> : vector<32x32xf32>
    %2 = tpu.matmul %0, %1, %cst {dimension_numbers = #tpu.dot_dimension_numbers<[1], [0], [0], [1], [0, 0, 1, 1], [], []>} : vector<32x64xf32>, vector<64x32xf32>, vector<32x32xf32> -> vector<32x32xf32>
    %c0_3 = arith.constant 0 : index
    %c0_4 = arith.constant 0 : index
    %3 = vector.load %arg3[%c0_3, %c0_4] : memref<8x32xf32, #tpu.memory_space<vmem>>, vector<1x32xf32>
    %4 = vector.broadcast %3 : vector<1x32xf32> to vector<32x32xf32>
    %5 = arith.addf %2, %4 : vector<32x32xf32>
    %cst_5 = arith.constant dense<0.000000e+00> : vector<32xf32>
    %6 = vector.multi_reduction <add>, %5, %cst_5 [1] : vector<32x32xf32> to vector<32xf32>
    %7 = vector.shape_cast %6 : vector<32xf32> to vector<32x1xf32>
    %8 = arith.mulf %5, %5 : vector<32x32xf32>
    %cst_6 = arith.constant dense<0.000000e+00> : vector<32xf32>
    %9 = vector.multi_reduction <add>, %8, %cst_6 [1] : vector<32x32xf32> to vector<32xf32>
    %10 = vector.shape_cast %9 : vector<32xf32> to vector<32x1xf32>
    %cst_7 = arith.constant 3.125000e-02 : f32
    %11 = vector.broadcast %cst_7 : f32 to vector<32x1xf32>
    %12 = arith.mulf %7, %11 : vector<32x1xf32>
    %cst_8 = arith.constant 3.125000e-02 : f32
    %13 = vector.broadcast %cst_8 : f32 to vector<32x1xf32>
    %14 = arith.mulf %10, %13 : vector<32x1xf32>
    %15 = arith.mulf %12, %12 : vector<32x1xf32>
    %16 = arith.subf %14, %15 : vector<32x1xf32>
    %cst_9 = arith.constant 0.000000e+00 : f32
    %17 = vector.broadcast %cst_9 : f32 to vector<32x1xf32>
    %18 = arith.maximumf %16, %17 : vector<32x1xf32>
    %19 = vector.broadcast %12 : vector<32x1xf32> to vector<32x32xf32>
    %20 = arith.subf %5, %19 : vector<32x32xf32>
    %cst_10 = arith.constant 9.99999974E-6 : f32
    %21 = vector.broadcast %cst_10 : f32 to vector<32x1xf32>
    %22 = arith.addf %18, %21 : vector<32x1xf32>
    %23 = math.rsqrt %22 : vector<32x1xf32>
    %24 = vector.broadcast %23 : vector<32x1xf32> to vector<32x32xf32>
    %25 = arith.mulf %20, %24 : vector<32x32xf32>
    %c1 = arith.constant 1 : index
    %c0_11 = arith.constant 0 : index
    %26 = vector.load %arg3[%c1, %c0_11] : memref<8x32xf32, #tpu.memory_space<vmem>>, vector<1x32xf32>
    %27 = vector.broadcast %26 : vector<1x32xf32> to vector<32x32xf32>
    %28 = arith.mulf %25, %27 : vector<32x32xf32>
    %c2 = arith.constant 2 : index
    %c0_12 = arith.constant 0 : index
    %29 = vector.load %arg3[%c2, %c0_12] : memref<8x32xf32, #tpu.memory_space<vmem>>, vector<1x32xf32>
    %30 = vector.broadcast %29 : vector<1x32xf32> to vector<32x32xf32>
    %31 = arith.addf %28, %30 : vector<32x32xf32>
    %c0_13 = arith.constant 0 : index
    %c0_14 = arith.constant 0 : index
    %32 = vector.load %arg4[%c0_13, %c0_14] : memref<32x32xf32, #tpu.memory_space<vmem>>, vector<32x32xf32>
    tpu.vector_store %arg4[%c0_13, %c0_14], %31 {strides = array<i32>} : memref<32x32xf32, #tpu.memory_space<vmem>>, vector<32x32xf32>,
    return
  }
  func.func @transform_0(%arg0: i32) -> (i32, i32) {
    %c0_i32 = arith.constant 0 : i32
    %c0_i32_0 = arith.constant 0 : i32
    return %arg0, %c0_i32 : i32, i32
  }
  func.func @transform_1(%arg0: i32) -> (i32, i32) {
    %c0_i32 = arith.constant 0 : i32
    %c0_i32_0 = arith.constant 0 : i32
    %c0_i32_1 = arith.constant 0 : i32
    return %c0_i32, %c0_i32_0 : i32, i32
  }
  func.func @transform_2(%arg0: i32) -> (i32, i32) {
    %c0_i32 = arith.constant 0 : i32
    %c0_i32_0 = arith.constant 0 : i32
    %c0_i32_1 = arith.constant 0 : i32
    return %c0_i32, %c0_i32_0 : i32, i32
  }
  func.func @transform_3(%arg0: i32) -> (i32, i32) {
    %c0_i32 = arith.constant 0 : i32
    %c0_i32_0 = arith.constant 0 : i32
    return %arg0, %c0_i32 : i32, i32
  }
}

</mosaic_0001>

<bundles_post_ra>
// kernel: tpu_custom_call.1
= control target key start
LH: loop header
LB: loop body
LE: loop exit
PB: predicated region body
PF: predicated region fallthrough
CT: control target
= control target key end

     0   :  { %vm32_vm0 = vcmask 523264   ;;  %s453_s0 = inlined_call_operand.vmem [shape: f32[32,64], index: 0, kind: input, shape index: {}]   ;;  %s454_s1 = inlined_call_operand.vmem [shape: f32[64,32], index: 1, kind: input, shape index: {}]   ;;  %s455_s2 = inlined_call_operand.vmem [shape: f32[8,32], index: 2, kind: input, shape index: {}]   ;;  %s456_s3 = inlined_call_operand.hbm [shape: f32[32,32], index: 3, kind: output, shape index: {}]  }
   0x1   :  { %v19_v0 = vld [vmem:[%s454_s1] sm:$0xff]  ;;  %v20_v1 = vld [vmem:[%s454_s1 + $0x8] sm:$0xff]  ;;  %v21_v2 = vld [vmem:[%s454_s1 + $0x10] sm:$0xff] }
   0x2   :  { %v274_v3 = vpack.c.bf16 %v20_v1, %v19_v0  ;;  %v22_v4 = vld [vmem:[%s454_s1 + $0x18] sm:$0xff]  ;;  %v23_v6 = vld [vmem:[%s454_s1 + $0x20] sm:$0xff]  ;;  %v24_v7 = vld [vmem:[%s454_s1 + $0x28] sm:$0xff] }
   0x3   :  { %v278_v5 = vpack.c.bf16 %v22_v4, %v21_v2  ;;  %v15_v8 = vld [vmem:[%s453_s0] sm:$0xff]  ;;  %v17_v9 = vld [vmem:[%s453_s0 + $0x10] sm:$0xff] }
   0x4   :  { %275 = vmatprep.subr.bf16.mxu0 %v274_v3  ;;  %290 = vmatprep.subr.bf16.mxu1 %v274_v3 }
   0x5   :  { %277 = vmatpush3.bf16.msra.mxu0 %v274_v3  ;;  %294 = vmatpush3.bf16.msra.mxu1 %v274_v3 }
   0x6   :  { %8 = vsyncpa [#allocation3], 0  ;;  %279 = vmatprep.subr.bf16.mxu0 %v278_v5  ;;  %291 = vmatprep.subr.bf16.mxu1 %v278_v5  ;;  %v282_v10 = vpack.c.bf16 %v24_v7, %v23_v6  ;;  %v25_v11 = vld [vmem:[%s454_s1 + $0x30] sm:$0xff]  ;;  %v26_v12 = vld [vmem:[%s454_s1 + $0x38] sm:$0xff]  ;;  %vm130_vm1 = vcmask 261120   ;;  %s333_s13 = smov [#allocation2]  }
   0x7   :  { %268 = vmatprep.mubr.msk.f32.mxu0 %vm32_vm0, %v15_v8  ;;  %271 = vmatprep.mubr.msk.f32.mxu1 %vm32_vm0, %v17_v9  ;;  %v286_v13 = vpack.c.bf16 %v26_v12, %v25_v11  ;;  %v16_v14 = vld [vmem:[%s453_s0 + $0x8] sm:$0xff]  ;;  %v18_v15 = vld [vmem:[%s453_s0 + $0x18] sm:$0xff]  ;;  %v233_v16 = vld [vmem:[%s455_s2] ss:$0 sm:$0xff]  ;;  %s222_s14 = sshll.u32 %s333_s13, 4  ;;  %s223_s14 = int_to_ptr.vmem [resolvable:$true] %s222_s14 }
   0x8   :  { %v238_v8 = vld [vmem:[%s455_s2 + $0x1] ss:$0 sm:$0xff]  ;;  %v239_v12 = vld [vmem:[%s455_s2 + $0x2] ss:$0 sm:$0xff]  ;;  %s309_s2 = scalar_lea.vmem %s223_s14, 512  ;;  %p314_p1 = scmp.lt.s32.totalorder %s223_s14, %s223_s14 }
   0x9   :  { %281 = vmatpush3.bf16.msra.mxu0 %v278_v5  ;;  %295 = vmatpush3.bf16.msra.mxu1 %v278_v5  ;;  %p310_p0 = scmp.ne.s32.totalorder %s223_s14, %s309_s2  ;;  %p315_p2 = scmp.lt.s32.totalorder %s309_s2, %s309_s2 }
   0xa   :  { %283 = vmatprep.subr.bf16.mxu0 %v282_v10  ;;  %292 = vmatprep.subr.bf16.mxu1 %v282_v10 }
   0xb   :  { %p316_p3 = por %p315_p2, %p314_p1 }
   0xd   :  { %285 = vmatpush3.bf16.msra.mxu0 %v282_v10  ;;  %296 = vmatpush3.bf16.msra.mxu1 %v282_v10  ;;  %p317_p4 = pnand %p316_p3, %p310_p0 }
   0xe   :  { %287 = vmatprep.subr.bf16.mxu0 %v286_v13  ;;  %293 = vmatprep.subr.bf16.mxu1 %v286_v13 }
  0x11   :  { %289 = vmatpush3.bf16.msra.mxu0 %v286_v13  ;;  %297 = vmatpush3.bf16.msra.mxu1 %v286_v13 }
  0x14   :  { %269 = vmatmul.mubr.msk.f32.vlgmr.msra.gmra.mrb[0].mxu0 %vm32_vm0, %v16_v14  ;;  %272 = vmatmul.mubr.msk.f32.vlgmr.msra.gmra.mrb[0].mxu1 %vm32_vm0, %v18_v15 }
  0xe7   :  { %v270_v17 = vpop.f32.mrb[0].mxu0  ;;  %v273_v18 = vpop.f32.mrb[0].mxu1 }
  0xe8   :  { %v399_v19 = vadd.f32 %v270_v17, %v233_v16  ;;  %v401_v20 = vadd.f32 %v273_v18, %v233_v16  ;;  %v111_v21 = vpop.f32.mrb[1].mxu0  ;;  %v121_v22 = vpop.f32.mrb[1].mxu1 }
  0xe9   :  { %v403_v23 = vadd.f32 %v233_v16, %v111_v21  ;;  %v405_v24 = vadd.f32 %v233_v16, %v121_v22 }
  0xea   :  { %v140_v25 = vsel %vm130_vm1, %v401_v20, 0.0  ;;  %v134_v26 = vsel %vm130_vm1, %v399_v19, 0.0  ;;  %v144_v29 = vmul.f32 %v399_v19, %v399_v19  ;;  %v146_v33 = vmul.f32 %v401_v20, %v401_v20 }
  0xeb   :  { %141 = vadd.xlane.f32.xlu1 %v140_v25  ;;  %135 = vadd.xlane.f32.xlu0 %v134_v26  ;;  %v137_v27 = vsel %vm130_vm1, %v405_v24, 0.0  ;;  %v131_v28 = vsel %vm130_vm1, %v403_v23, 0.0  ;;  %v143_v30 = vmul.f32 %v403_v23, %v403_v23  ;;  %v145_v34 = vmul.f32 %v405_v24, %v405_v24 }
  0xec   :  { %v150_v31 = vsel %vm130_vm1, %v144_v29, 0.0  ;;  %v156_v35 = vsel %vm130_vm1, %v146_v33, 0.0 }
  0xed   :  { %v147_v32 = vsel %vm130_vm1, %v143_v30, 0.0  ;;  %v153_v36 = vsel %vm130_vm1, %v145_v34, 0.0 }
  0xef   :  { %138 = vadd.xlane.f32.xlu1 %v137_v27  ;;  %132 = vadd.xlane.f32.xlu0 %v131_v28 }
  0xf3   :  { %151 = vadd.xlane.f32.xlu1 %v150_v31  ;;  %148 = vadd.xlane.f32.xlu0 %v147_v32 }
  0xf7   :  { %157 = vadd.xlane.f32.xlu1 %v156_v35  ;;  %154 = vadd.xlane.f32.xlu0 %v153_v36 }
 0x178   :  { %v142_v37 = vpop.xlane.xlu1 %141  ;;  %v136_v38 = vpop.xlane.xlu0 %135 }
 0x179   :  { %v160_v41 = vmul.f32 0.03125, %v136_v38  ;;  %v162_v43 = vmul.f32 0.03125, %v142_v37 }
 0x17b   :  { %v168_v47 = vmul.f32 %v160_v41, %v160_v41  ;;  %v170_v53 = vmul.f32 %v162_v43, %v162_v43  ;;  %v180_v5 = vsub.f32 %v399_v19, %v160_v41  ;;  %v182_v13 = vsub.f32 %v401_v20, %v162_v43 }
 0x17c   :  { %v139_v39 = vpop.xlane.xlu1 %138  ;;  %v133_v40 = vpop.xlane.xlu0 %132 }
 0x17d   :  { %v159_v42 = vmul.f32 0.03125, %v133_v40  ;;  %v161_v44 = vmul.f32 0.03125, %v139_v39 }
 0x17f   :  { %v167_v48 = vmul.f32 %v159_v42, %v159_v42  ;;  %v169_v54 = vmul.f32 %v161_v44, %v161_v44  ;;  %v179_v7 = vsub.f32 %v403_v23, %v159_v42  ;;  %v181_v16 = vsub.f32 %v405_v24, %v161_v44 }
 0x180   :  { %v152_v45 = vpop.xlane.xlu1 %151  ;;  %v149_v46 = vpop.xlane.xlu0 %148 }
 0x181   :  { %v164_v49 = vmul.f32 0.03125, %v152_v45  ;;  %v163_v50 = vmul.f32 0.03125, %v149_v46 }
 0x183   :  { %v172_v51 = vsub.f32 %v164_v49, %v168_v47  ;;  %v171_v52 = vsub.f32 %v163_v50, %v167_v48 }
 0x184   :  { %v158_v55 = vpop.xlane.xlu1 %157  ;;  %v155_v56 = vpop.xlane.xlu0 %154 }
 0x185   :  { %v176_v57 = vmax.f32 %v172_v51, 0.0  ;;  %v175_v58 = vmax.f32 %v171_v52, 0.0  ;;  %v166_v59 = vmul.f32 0.03125, %v158_v55  ;;  %v165_v60 = vmul.f32 0.03125, %v155_v56 }
 0x187   :  { %v184_v61 = vadd.f32 1e-05, %v176_v57  ;;  %v183_v62 = vadd.f32 1e-05, %v175_v58  ;;  %v174_v63 = vsub.f32 %v166_v59, %v170_v53  ;;  %v173_v0 = vsub.f32 %v165_v60, %v169_v54 }
 0x189   :  { %301 = vrsqrt.f32 %v184_v61  ;;  %v178_v1 = vmax.f32 %v174_v63, 0.0  ;;  %v177_v2 = vmax.f32 %v173_v0, 0.0 }
 0x18a   :  { %303 = vrsqrt.f32 %v183_v62 }
 0x18b   :  { %v186_v3 = vadd.f32 1e-05, %v178_v1  ;;  %v185_v4 = vadd.f32 1e-05, %v177_v2 }
 0x18d   :  { %305 = vrsqrt.f32 %v186_v3 }
 0x18e   :  { %307 = vrsqrt.f32 %v185_v4 }
 0x193   :  { %v302_v6 = vpop.eup %301 }
 0x194   :  { %v304_v9 = vpop.eup %303  ;;  %v192_v10 = vmul.f32 %v302_v6, %v180_v5 }
 0x195   :  { %v191_v11 = vmul.f32 %v304_v9, %v179_v7 }
 0x196   :  { %v201_v14 = vmul.f32 %v238_v8, %v192_v10 }
 0x197   :  { %v306_v15 = vpop.eup %305  ;;  %v200_v17 = vmul.f32 %v238_v8, %v191_v11 }
 0x198   :  { %v308_v18 = vpop.eup %307  ;;  %v194_v19 = vmul.f32 %v306_v15, %v182_v13  ;;  %v210_v21 = vadd.f32 %v239_v12, %v201_v14 }
 0x199   :  { %v193_v22 = vmul.f32 %v308_v18, %v181_v16  ;;  %v209_v23 = vadd.f32 %v239_v12, %v200_v17 }
 0x19a   :  { %v203_v25 = vmul.f32 %v238_v8, %v194_v19  ;;  %214 = vst.msk [vmem:[#allocation2 + $0x8] sm:$0xff] %vm130_vm1, %v210_v21 }
 0x19b   :  { %v202_v26 = vmul.f32 %v238_v8, %v193_v22  ;;  %213 = vst.msk [vmem:[#allocation2] sm:$0xff] %vm130_vm1, %v209_v23 }
 0x19c   :  { %v212_v27 = vadd.f32 %v239_v12, %v203_v25 }
 0x19d   :  { %v211_v20 = vadd.f32 %v239_v12, %v202_v26 }
 0x19e   :  { %216 = vst.msk [vmem:[#allocation2 + $0x18] sm:$0xff] %vm130_vm1, %v212_v27 }
 0x19f   :  { %215 = vst.msk [vmem:[#allocation2 + $0x10] sm:$0xff] %vm130_vm1, %v211_v20 }
 0x1a0   :  { %320 = shalt.err (!%p317_p4)
}
 0x1a1   :  { %s321_s17 = scalar_lea.hbm %s456_s3, 512 }
 0x1a2   :  { %p322_p5 = scmp.ne.s32.totalorder %s456_s3, %s321_s17  ;;  %p325_p6 = scmp.lt.u32.totalorder %s321_s17, %s456_s3 }
 0x1a4   :  { %p327_p7 = pnand %p325_p6, %p322_p5 }
 0x1a6   :  { %330 = shalt.err (!%p327_p7)
}
 0x1a7   :  { %s334_s22 = smov 128   ;;  %s335_s23 = smov 8  }
 0x1a8   :  { %228 = dma.vmem_to_hbm [thread:$0]  %s223_s14, 512, %s456_s3, [#allocation3], %s334_s22, %s334_s22, %s335_s23  }
 0x1a9   :  { %331 = dma.done.wait [#allocation3], 512  }
 0x1aa   :  { %332 = vsyncadd [#allocation3], 4294966784 }
 0x1ab   :  { %232 = vsyncpa [#allocation3], 1 }

</bundles_post_ra>
